<compile_context>
chip_gen: v5e
topology: v5e:2x2
jax: 0.10.0
libtpu: 0.0.40
codegen_flags: <defaults>
</compile_context>

<pallas_src>
import functools

import jax
import jax.numpy as jnp
import numpy as np
from jax.experimental import pallas as pl
from jax.experimental.pallas import tpu as pltpu

LANE = 128  # TPU vreg lane width


def _round_up(n, m):
    return ((n + m - 1) // m) * m


# ----------------------------------------------------------------------------- kernel
def rnn_kernel(x_ref, wih_ref, whh_ref, brnn_ref, wfc_ref, bfc_ref, out_ref, *, T, B):
    """x_ref: (T*B, D_in) time-major (assembled in the wrapper).  All other operands are
    lane-padded: wih (D_in,Hp), whh (Hp,Hp), brnn (1,Hp), wfc (Hp,Dp), bfc (1,Dp)."""
    Hp = whh_ref.shape[0]

    # Hoisted input projection (off the serial chain): ONE matmul for all timesteps,
    # with the combined RNN bias folded in once.
    xproj = (jnp.dot(x_ref[...], wih_ref[...], preferred_element_type=jnp.float32)
             + brnn_ref[...])                                          # (T*B, Hp)

    # Serial recurrence, fully unrolled (T is small & static): per step the critical
    # path is a single (B,Hp)@(Hp,Hp) MXU matmul + an EUP tanh.  Each xproj slice is an
    # aligned (B=8)-sublane tile.  whh is loaded once; if a bundle dump ever shows vreg
    # spills here, re-read whh_ref[...] per step instead (3 vld/cycle is plenty).
    whh = whh_ref[...]
    h = jnp.zeros((B, Hp), jnp.float32)
    for t in range(T):
        h = jnp.tanh(xproj[t * B:(t + 1) * B, :]
                     + jnp.dot(h, whh, preferred_element_type=jnp.float32))

    # fc on the last hidden state; lane-dense padded (B, Dp) store (no masked vst).
    out_ref[...] = (jnp.dot(h, wfc_ref[...], preferred_element_type=jnp.float32)
                    + bfc_ref[...]).astype(out_ref.dtype)


# ----------------------------------------------------------------------------- wrapper
def prepare_params(W_ih, W_hh, b_ih, b_hh, W_fc, b_fc):
    """One-time weight prep (transposes / lane-padding / bias fold) OUTSIDE the per-call
    jitted path.  Padded hidden units stay exactly 0 through the recurrence, and padded
    fc rows are 0, so real outputs are unchanged."""
    H, _ = W_ih.shape
    D_out = W_fc.shape[0]
    Hp = _round_up(H, LANE)
    Dp = _round_up(D_out, LANE)

    f32 = jnp.float32
    W_ih_T = jnp.pad(W_ih.T.astype(f32), ((0, 0), (0, Hp - H)))                 # (D_in, Hp)
    W_hh_T = jnp.pad(W_hh.T.astype(f32), ((0, Hp - H), (0, Hp - H)))            # (Hp, Hp)
    b_rnn = jnp.pad((b_ih + b_hh).astype(f32).reshape(1, H), ((0, 0), (0, Hp - H)))  # (1, Hp)
    W_fc_T = jnp.pad(W_fc.T.astype(f32), ((0, Hp - H), (0, Dp - D_out)))        # (Hp, Dp)
    b_fc2 = jnp.pad(b_fc.astype(f32).reshape(1, D_out), ((0, 0), (0, Dp - D_out)))   # (1, Dp)

    params = tuple(jax.device_put(p) for p in (W_ih_T, W_hh_T, b_rnn, W_fc_T, b_fc2))
    return params, D_out


@functools.partial(jax.jit, static_argnames=("d_out",))
def _forward(x_btd, wih_p, whh_p, brnn_p, wfc_p, bfc_p, *, d_out):
    B, T, D_in = x_btd.shape
    Hp = whh_p.shape[0]
    Dp = wfc_p.shape[1]

    # Tiny (4 KiB) time-major layout op in the wrapper; kernel then uses aligned
    # static sublane slices instead of in-kernel cross-sublane assembly.
    x_tm = x_btd.astype(jnp.float32).transpose(1, 0, 2).reshape(T * B, D_in)

    flops = 2 * (T * B * D_in * Hp + T * B * Hp * Hp + B * Hp * Dp)
    bytes_accessed = 4 * (T * B * D_in + D_in * Hp + Hp * Hp + Hp
                          + Hp * Dp + Dp + B * Dp)

    vmem = pl.BlockSpec(memory_space=pltpu.MemorySpace.VMEM)
    out_padded = pl.pallas_call(
        functools.partial(rnn_kernel, T=T, B=B),
        out_shape=jax.ShapeDtypeStruct((B, Dp), jnp.float32),
        in_specs=[vmem] * 6,
        out_specs=vmem,
        cost_estimate=pl.CostEstimate(
            flops=flops,
            transcendentals=T * B * Hp,
            bytes_accessed=bytes_accessed,
        ),
    )(x_tm, wih_p, whh_p, brnn_p, wfc_p, bfc_p)

    return out_padded[:, :d_out]


def make_rnn_predictor(W_ih, W_hh, b_ih, b_hh, W_fc, b_fc):
    """Returns a forward(x_btd) -> (B, D_out) callable with weights prepared once."""
    params, d_out = prepare_params(W_ih, W_hh, b_ih, b_hh, W_fc, b_fc)
    return lambda x_btd: _forward(x_btd, *params, d_out=d_out)


# ----------------------------------------------------------------------------- reference
def reference_forward(x_btd, W_ih, W_hh, b_ih, b_hh, W_fc, b_fc):
    """Pure-JAX reference.  Uses HIGHEST matmul precision so it matches the f32-accurate
    MXU multi-pass matmuls used inside the Pallas kernel (XLA's DEFAULT on TPU may drop
    to single-pass bf16, which would spuriously inflate the comparison error)."""
    B, T, _ = x_btd.shape
    H = W_ih.shape[0]
    hi = jax.lax.Precision.HIGHEST
    h = jnp.zeros((B, H), jnp.float32)
    for t in range(T):
        h = jnp.tanh(jnp.dot(x_btd[:, t, :], W_ih.T, precision=hi) + b_ih
                     + jnp.dot(h, W_hh.T, precision=hi) + b_hh)
    return jnp.dot(h, W_fc.T, precision=hi) + b_fc


if __name__ == "__main__":
    # Small shapes implied by the module: batch=8, seq=8, input_dim=16,
    # hidden_dim=32, output_dim=4, num_layers=1.
    B, T, D_in, H, D_out = 8, 8, 16, 32, 4

    key = jax.random.PRNGKey(0)
    kx, k1, k2, k3, k4, k5, k6 = jax.random.split(key, 7)

    x = jax.random.normal(kx, (B, T, D_in), jnp.float32)

    # Deterministic parameter init (same shapes as nn.RNN / nn.Linear params).
    scale = 1.0 / np.sqrt(H)
    W_ih = jax.random.uniform(k1, (H, D_in), jnp.float32, -scale, scale)
    W_hh = jax.random.uniform(k2, (H, H), jnp.float32, -scale, scale)
    b_ih = jax.random.uniform(k3, (H,), jnp.float32, -scale, scale)
    b_hh = jax.random.uniform(k4, (H,), jnp.float32, -scale, scale)
    W_fc = jax.random.uniform(k5, (D_out, H), jnp.float32, -scale, scale)
    b_fc = jax.random.uniform(k6, (D_out,), jnp.float32, -scale, scale)

    forward = make_rnn_predictor(W_ih, W_hh, b_ih, b_hh, W_fc, b_fc)
    out = jax.block_until_ready(forward(x))

    ref = jax.block_until_ready(reference_forward(x, W_ih, W_hh, b_ih, b_hh, W_fc, b_fc))
    np.testing.assert_allclose(np.asarray(out), np.asarray(ref), rtol=1e-4, atol=1e-5)

    print("KERNEL_OK")
</pallas_src>

<mosaic_0001>
module attributes {stable_mosaic.version = 11 : i64} {
  func.func @rnn_kernel(%arg0: memref<64x16xf32, #tpu.memory_space<vmem>>, %arg1: memref<16x128xf32, #tpu.memory_space<vmem>>, %arg2: memref<128x128xf32, #tpu.memory_space<vmem>>, %arg3: memref<1x128xf32, #tpu.memory_space<vmem>>, %arg4: memref<128x128xf32, #tpu.memory_space<vmem>>, %arg5: memref<1x128xf32, #tpu.memory_space<vmem>>, %arg6: memref<8x128xf32, #tpu.memory_space<vmem>>) attributes {dimension_semantics = [], scalar_prefetch = 0 : i64, scratch_operands = 0 : i64, tpu.core_type = #tpu.core_type<tc>} {
    %c0 = arith.constant 0 : index
    %c0_0 = arith.constant 0 : index
    %0 = vector.load %arg0[%c0, %c0_0] : memref<64x16xf32, #tpu.memory_space<vmem>>, vector<64x16xf32>
    %c0_1 = arith.constant 0 : index
    %c0_2 = arith.constant 0 : index
    %1 = vector.load %arg1[%c0_1, %c0_2] : memref<16x128xf32, #tpu.memory_space<vmem>>, vector<16x128xf32>
    %cst = arith.constant dense<0.000000e+00> : vector<64x128xf32>
    %2 = tpu.matmul %0, %1, %cst {dimension_numbers = #tpu.dot_dimension_numbers<[1], [0], [0], [1], [0, 0, 1, 1], [], []>} : vector<64x16xf32>, vector<16x128xf32>, vector<64x128xf32> -> vector<64x128xf32>
    %c0_3 = arith.constant 0 : index
    %c0_4 = arith.constant 0 : index
    %3 = vector.load %arg3[%c0_3, %c0_4] : memref<1x128xf32, #tpu.memory_space<vmem>>, vector<1x128xf32>
    %4 = vector.broadcast %3 : vector<1x128xf32> to vector<64x128xf32>
    %5 = arith.addf %2, %4 : vector<64x128xf32>
    %c0_5 = arith.constant 0 : index
    %c0_6 = arith.constant 0 : index
    %6 = vector.load %arg2[%c0_5, %c0_6] : memref<128x128xf32, #tpu.memory_space<vmem>>, vector<128x128xf32>
    %cst_7 = arith.constant 0.000000e+00 : f32
    %7 = vector.broadcast %cst_7 : f32 to vector<8x128xf32>
    %8 = vector.extract_strided_slice %5 {offsets = [0, 0], sizes = [8, 128], strides = [1, 1]} : vector<64x128xf32> to vector<8x128xf32>
    %cst_8 = arith.constant dense<0.000000e+00> : vector<8x128xf32>
    %9 = tpu.matmul %7, %6, %cst_8 {dimension_numbers = #tpu.dot_dimension_numbers<[1], [0], [0], [1], [0, 0, 1, 1], [], []>} : vector<8x128xf32>, vector<128x128xf32>, vector<8x128xf32> -> vector<8x128xf32>
    %10 = arith.addf %8, %9 : vector<8x128xf32>
    %11 = math.tanh %10 : vector<8x128xf32>
    %12 = vector.extract_strided_slice %5 {offsets = [8, 0], sizes = [8, 128], strides = [1, 1]} : vector<64x128xf32> to vector<8x128xf32>
    %cst_9 = arith.constant dense<0.000000e+00> : vector<8x128xf32>
    %13 = tpu.matmul %11, %6, %cst_9 {dimension_numbers = #tpu.dot_dimension_numbers<[1], [0], [0], [1], [0, 0, 1, 1], [], []>} : vector<8x128xf32>, vector<128x128xf32>, vector<8x128xf32> -> vector<8x128xf32>
    %14 = arith.addf %12, %13 : vector<8x128xf32>
    %15 = math.tanh %14 : vector<8x128xf32>
    %16 = vector.extract_strided_slice %5 {offsets = [16, 0], sizes = [8, 128], strides = [1, 1]} : vector<64x128xf32> to vector<8x128xf32>
    %cst_10 = arith.constant dense<0.000000e+00> : vector<8x128xf32>
    %17 = tpu.matmul %15, %6, %cst_10 {dimension_numbers = #tpu.dot_dimension_numbers<[1], [0], [0], [1], [0, 0, 1, 1], [], []>} : vector<8x128xf32>, vector<128x128xf32>, vector<8x128xf32> -> vector<8x128xf32>
    %18 = arith.addf %16, %17 : vector<8x128xf32>
    %19 = math.tanh %18 : vector<8x128xf32>
    %20 = vector.extract_strided_slice %5 {offsets = [24, 0], sizes = [8, 128], strides = [1, 1]} : vector<64x128xf32> to vector<8x128xf32>
    %cst_11 = arith.constant dense<0.000000e+00> : vector<8x128xf32>
    %21 = tpu.matmul %19, %6, %cst_11 {dimension_numbers = #tpu.dot_dimension_numbers<[1], [0], [0], [1], [0, 0, 1, 1], [], []>} : vector<8x128xf32>, vector<128x128xf32>, vector<8x128xf32> -> vector<8x128xf32>
    %22 = arith.addf %20, %21 : vector<8x128xf32>
    %23 = math.tanh %22 : vector<8x128xf32>
    %24 = vector.extract_strided_slice %5 {offsets = [32, 0], sizes = [8, 128], strides = [1, 1]} : vector<64x128xf32> to vector<8x128xf32>
    %cst_12 = arith.constant dense<0.000000e+00> : vector<8x128xf32>
    %25 = tpu.matmul %23, %6, %cst_12 {dimension_numbers = #tpu.dot_dimension_numbers<[1], [0], [0], [1], [0, 0, 1, 1], [], []>} : vector<8x128xf32>, vector<128x128xf32>, vector<8x128xf32> -> vector<8x128xf32>
    %26 = arith.addf %24, %25 : vector<8x128xf32>
    %27 = math.tanh %26 : vector<8x128xf32>
    %28 = vector.extract_strided_slice %5 {offsets = [40, 0], sizes = [8, 128], strides = [1, 1]} : vector<64x128xf32> to vector<8x128xf32>
    %cst_13 = arith.constant dense<0.000000e+00> : vector<8x128xf32>
    %29 = tpu.matmul %27, %6, %cst_13 {dimension_numbers = #tpu.dot_dimension_numbers<[1], [0], [0], [1], [0, 0, 1, 1], [], []>} : vector<8x128xf32>, vector<128x128xf32>, vector<8x128xf32> -> vector<8x128xf32>
    %30 = arith.addf %28, %29 : vector<8x128xf32>
    %31 = math.tanh %30 : vector<8x128xf32>
    %32 = vector.extract_strided_slice %5 {offsets = [48, 0], sizes = [8, 128], strides = [1, 1]} : vector<64x128xf32> to vector<8x128xf32>
    %cst_14 = arith.constant dense<0.000000e+00> : vector<8x128xf32>
    %33 = tpu.matmul %31, %6, %cst_14 {dimension_numbers = #tpu.dot_dimension_numbers<[1], [0], [0], [1], [0, 0, 1, 1], [], []>} : vector<8x128xf32>, vector<128x128xf32>, vector<8x128xf32> -> vector<8x128xf32>
    %34 = arith.addf %32, %33 : vector<8x128xf32>
    %35 = math.tanh %34 : vector<8x128xf32>
    %36 = vector.extract_strided_slice %5 {offsets = [56, 0], sizes = [8, 128], strides = [1, 1]} : vector<64x128xf32> to vector<8x128xf32>
    %cst_15 = arith.constant dense<0.000000e+00> : vector<8x128xf32>
    %37 = tpu.matmul %35, %6, %cst_15 {dimension_numbers = #tpu.dot_dimension_numbers<[1], [0], [0], [1], [0, 0, 1, 1], [], []>} : vector<8x128xf32>, vector<128x128xf32>, vector<8x128xf32> -> vector<8x128xf32>
    %38 = arith.addf %36, %37 : vector<8x128xf32>
    %39 = math.tanh %38 : vector<8x128xf32>
    %c0_16 = arith.constant 0 : index
    %c0_17 = arith.constant 0 : index
    %40 = vector.load %arg4[%c0_16, %c0_17] : memref<128x128xf32, #tpu.memory_space<vmem>>, vector<128x128xf32>
    %cst_18 = arith.constant dense<0.000000e+00> : vector<8x128xf32>
    %41 = tpu.matmul %39, %40, %cst_18 {dimension_numbers = #tpu.dot_dimension_numbers<[1], [0], [0], [1], [0, 0, 1, 1], [], []>} : vector<8x128xf32>, vector<128x128xf32>, vector<8x128xf32> -> vector<8x128xf32>
    %c0_19 = arith.constant 0 : index
    %c0_20 = arith.constant 0 : index
    %42 = vector.load %arg5[%c0_19, %c0_20] : memref<1x128xf32, #tpu.memory_space<vmem>>, vector<1x128xf32>
    %43 = vector.broadcast %42 : vector<1x128xf32> to vector<8x128xf32>
    %44 = arith.addf %41, %43 : vector<8x128xf32>
    %c0_21 = arith.constant 0 : index
    %c0_22 = arith.constant 0 : index
    %45 = vector.load %arg6[%c0_21, %c0_22] : memref<8x128xf32, #tpu.memory_space<vmem>>, vector<8x128xf32>
    tpu.vector_store %arg6[%c0_21, %c0_22], %44 {strides = array<i32>} : memref<8x128xf32, #tpu.memory_space<vmem>>, vector<8x128xf32>,
    return
  }
}

</mosaic_0001>

<bundles_post_ra>
// kernel: _forward.1
= control target key start
LH: loop header
LB: loop body
LE: loop exit
PB: predicated region body
PF: predicated region fallthrough
CT: control target
= control target key end

     0   :  { %11 = vsyncpa [#allocation3], 0  ;;  %s762_s0 = inlined_call_operand.vmem [shape: f32[64,16], index: 0, kind: input, shape index: {}]   ;;  %s763_s1 = inlined_call_operand.hbm [shape: f32[16,128], index: 1, kind: input, shape index: {}]   ;;  %s764_s2 = inlined_call_operand.vmem [shape: f32[128,128], index: 2, kind: input, shape index: {}]   ;;  %s765_s3 = inlined_call_operand.vmem [shape: f32[1,128], index: 3, kind: input, shape index: {}]   ;;  %s766_s4 = inlined_call_operand.hbm [shape: f32[128,128], index: 4, kind: input, shape index: {}]   ;;  %s767_s5 = inlined_call_operand.vmem [shape: f32[1,128], index: 5, kind: input, shape index: {}]   ;;  %s768_s6 = inlined_call_operand.vmem [shape: f32[8,128], index: 6, kind: output, shape index: {}]  }
   0x1   :  { %s19_s23 = sshll.u32 %s763_s1, 4  ;;  %s20_s23 = int_to_ptr.hbm [resolvable:$true] %s19_s23 }
   0x2   :  { %12 = vsyncpa [#allocation5], 0  ;;  %s457_s24 = smov [#allocation2]   ;;  %s36_s28 = sshll.u32 %s766_s4, 4  ;;  %s37_s28 = int_to_ptr.hbm [resolvable:$true] %s36_s28 }
   0x3   :  { %s21_s25 = sshll.u32 %s457_s24, 4  ;;  %s458_s29 = smov 128   ;;  %s22_s25 = int_to_ptr.vmem [resolvable:$true] %s21_s25 }
   0x4   :  { %s459_s30 = smov 8   ;;  %s460_s7 = smov [#allocation4]  }
   0x5   :  { %27 = dma.hbm_to_vmem [thread:$0]  %s20_s23, 256, %s22_s25, [#allocation3], %s458_s29, %s458_s29, %s459_s30  }
   0x6   :  { %s38_s8 = sshll.u32 %s460_s7, 4  ;;  %s39_s8 = int_to_ptr.vmem [resolvable:$true] %s38_s8 }
   0x7   :  { %44 = dma.hbm_to_vmem [thread:$0]  %s37_s28, 2048, %s39_s8, [#allocation5], %s458_s29, %s458_s29, %s459_s30  }
   0x8   :  { %453 = dma.done.wait [#allocation3], 256  }
   0x9   :  { %454 = vsyncadd [#allocation3], 4294967040 }
   0xa   :  { %455 = dma.done.wait [#allocation5], 2048  }
   0xb   :  { %456 = vsyncadd [#allocation5], 4294965248  ;;  %v506_v0 = vld [vmem:[%s764_s2 + $0x78] sm:$0xff]  ;;  %v511_v1 = vld [vmem:[%s764_s2 + $0x70] sm:$0xff]  ;;  %vm69_vm0 = vcmask 130048   ;;  %v461_v19 = vmov 0.0  }
   0xc   :  { %151 = vmatpush.msra.mxu1 %v506_v0  ;;  %173 = vmatpush.msra.mxu2 %v506_v0  ;;  %v518_v2 = vld [vmem:[%s764_s2 + $0x68] sm:$0xff]  ;;  %v526_v3 = vld [vmem:[%s764_s2 + $0x60] sm:$0xff]  ;;  %v536_v7 = vld [vmem:[%s764_s2 + $0x58] sm:$0xff] }
   0xd   :  { %195 = vmatpush.msra.mxu3 %v506_v0  ;;  %v64_v4 = vld [vmem:[#allocation2 + $0x8] sm:$0xff]  ;;  %v63_v5 = vld [vmem:[#allocation2] sm:$0xff]  ;;  %v544_v8 = vld [vmem:[%s764_s2 + $0x50] sm:$0xff] }
   0xe   :  { %152 = vmatpush.msra.mxu1 %v511_v1  ;;  %174 = vmatpush.msra.mxu2 %v511_v1  ;;  %v55_v6 = vld [vmem:[%s762_s0] sm:$0xff]  ;;  %v553_v9 = vld [vmem:[%s764_s2 + $0x48] sm:$0xff]  ;;  %v571_v11 = vld [vmem:[%s764_s2 + $0x38] sm:$0xff] }
   0xf   :  { %196 = vmatpush.msra.mxu3 %v511_v1  ;;  %108 = vmatpush.msra.mxu0 %v64_v4  ;;  %v562_v10 = vld [vmem:[%s764_s2 + $0x40] sm:$0xff]  ;;  %v580_v12 = vld [vmem:[%s764_s2 + $0x30] sm:$0xff]  ;;  %v589_v13 = vld [vmem:[%s764_s2 + $0x28] sm:$0xff] }
  0x10   :  { %153 = vmatpush.msra.mxu1 %v518_v2  ;;  %175 = vmatpush.msra.mxu2 %v518_v2  ;;  %v598_v14 = vld [vmem:[%s764_s2 + $0x20] sm:$0xff]  ;;  %v607_v15 = vld [vmem:[%s764_s2 + $0x18] sm:$0xff]  ;;  %v616_v16 = vld [vmem:[%s764_s2 + $0x10] sm:$0xff] }
  0x11   :  { %197 = vmatpush.msra.mxu3 %v518_v2  ;;  %109 = vmatpush.msra.mxu0 %v63_v5  ;;  %v625_v17 = vld [vmem:[%s764_s2 + $0x8] sm:$0xff]  ;;  %v634_v18 = vld [vmem:[%s764_s2] sm:$0xff]  ;;  %v57_v27 = vld [vmem:[%s762_s0 + $0x10] sm:$0xff] }
  0x12   :  { %154 = vmatpush.msra.mxu1 %v526_v3  ;;  %374 = vmatmul.msk.f32.vlgmr.msra.gmra.mxu0 %vm69_vm0, %v55_v6  ;;  %v56_v20 = vld [vmem:[%s762_s0 + $0x8] sm:$0xff]  ;;  %v722_v21 = vld [vmem:[%s765_s3] ss:$0 sm:$0xff]  ;;  %v58_v33 = vld [vmem:[%s762_s0 + $0x18] sm:$0xff] }
  0x13   :  { %176 = vmatpush.msra.mxu2 %v526_v3  ;;  %198 = vmatpush.msra.mxu3 %v526_v3  ;;  %v59_v39 = vld [vmem:[%s762_s0 + $0x20] sm:$0xff]  ;;  %v60_v45 = vld [vmem:[%s762_s0 + $0x28] sm:$0xff]  ;;  %v61_v46 = vld [vmem:[%s762_s0 + $0x30] sm:$0xff] }
  0x14   :  { %155 = vmatpush.msra.mxu1 %v536_v7  ;;  %283 = vmatpush.msrb.mxu0 %v506_v0  ;;  %v62_v52 = vld [vmem:[%s762_s0 + $0x38] sm:$0xff]  ;;  %v342_v58 = vld [vmem:[#allocation4 + $0x78] sm:$0xff]  ;;  %v341_v59 = vld [vmem:[#allocation4 + $0x70] sm:$0xff] }
  0x15   :  { %177 = vmatpush.msra.mxu2 %v536_v7  ;;  %199 = vmatpush.msra.mxu3 %v536_v7  ;;  %v340_v61 = vld [vmem:[#allocation4 + $0x68] sm:$0xff]  ;;  %v339_v62 = vld [vmem:[#allocation4 + $0x60] sm:$0xff]  ;;  %v338_v63 = vld [vmem:[#allocation4 + $0x58] sm:$0xff] }
  0x16   :  { %156 = vmatpush.msra.mxu1 %v544_v8  ;;  %284 = vmatpush.msrb.mxu0 %v511_v1  ;;  %v334_v4 = vld [vmem:[#allocation4 + $0x38] sm:$0xff]  ;;  %v333_v5 = vld [vmem:[#allocation4 + $0x30] sm:$0xff]  ;;  %v332_v6 = vld [vmem:[#allocation4 + $0x28] sm:$0xff] }
  0x17   :  { %178 = vmatpush.msra.mxu2 %v544_v8  ;;  %200 = vmatpush.msra.mxu3 %v544_v8 }
  0x18   :  { %157 = vmatpush.msra.mxu1 %v553_v9  ;;  %285 = vmatpush.msrb.mxu0 %v518_v2 }
  0x19   :  { %179 = vmatpush.msra.mxu2 %v553_v9  ;;  %201 = vmatpush.msra.mxu3 %v553_v9 }
  0x1a   :  { %158 = vmatpush.msra.mxu1 %v562_v10  ;;  %286 = vmatpush.msrb.mxu0 %v526_v3 }
  0x1b   :  { %180 = vmatpush.msra.mxu2 %v562_v10  ;;  %202 = vmatpush.msra.mxu3 %v562_v10 }
  0x1c   :  { %159 = vmatpush.msra.mxu1 %v571_v11  ;;  %287 = vmatpush.msrb.mxu0 %v536_v7 }
  0x1d   :  { %181 = vmatpush.msra.mxu2 %v571_v11  ;;  %203 = vmatpush.msra.mxu3 %v571_v11 }
  0x1e   :  { %160 = vmatpush.msra.mxu1 %v580_v12  ;;  %288 = vmatpush.msrb.mxu0 %v544_v8 }
  0x1f   :  { %182 = vmatpush.msra.mxu2 %v580_v12  ;;  %204 = vmatpush.msra.mxu3 %v580_v12 }
  0x20   :  { %161 = vmatpush.msra.mxu1 %v589_v13  ;;  %289 = vmatpush.msrb.mxu0 %v553_v9 }
  0x21   :  { %183 = vmatpush.msra.mxu2 %v589_v13  ;;  %205 = vmatpush.msra.mxu3 %v589_v13 }
  0x22   :  { %162 = vmatpush.msra.mxu1 %v598_v14  ;;  %290 = vmatpush.msrb.mxu0 %v562_v10 }
  0x23   :  { %184 = vmatpush.msra.mxu2 %v598_v14  ;;  %206 = vmatpush.msra.mxu3 %v598_v14 }
  0x24   :  { %163 = vmatpush.msra.mxu1 %v607_v15  ;;  %291 = vmatpush.msrb.mxu0 %v571_v11 }
  0x25   :  { %185 = vmatpush.msra.mxu2 %v607_v15  ;;  %207 = vmatpush.msra.mxu3 %v607_v15 }
  0x26   :  { %164 = vmatpush.msra.mxu1 %v616_v16  ;;  %292 = vmatpush.msrb.mxu0 %v580_v12 }
  0x27   :  { %186 = vmatpush.msra.mxu2 %v616_v16  ;;  %208 = vmatpush.msra.mxu3 %v616_v16 }
  0x28   :  { %165 = vmatpush.msra.mxu1 %v625_v17  ;;  %293 = vmatpush.msrb.mxu0 %v589_v13 }
  0x29   :  { %187 = vmatpush.msra.mxu2 %v625_v17  ;;  %209 = vmatpush.msra.mxu3 %v625_v17 }
  0x2a   :  { %166 = vmatpush.msra.mxu1 %v634_v18  ;;  %294 = vmatpush.msrb.mxu0 %v598_v14 }
  0x2b   :  { %167 = vmatmul.f32.vlgmr.msra.gmra.mxu1 %v461_v19  ;;  %188 = vmatpush.msra.mxu2 %v634_v18 }
  0x2c   :  { %210 = vmatpush.msra.mxu3 %v634_v18  ;;  %217 = vmatpush.msrb.mxu1 %v506_v0 }
  0x2d   :  { %239 = vmatpush.msrb.mxu2 %v506_v0  ;;  %295 = vmatpush.msrb.mxu0 %v607_v15 }
  0x2e   :  { %261 = vmatpush.msrb.mxu3 %v506_v0  ;;  %218 = vmatpush.msrb.mxu1 %v511_v1 }
  0x2f   :  { %240 = vmatpush.msrb.mxu2 %v511_v1  ;;  %296 = vmatpush.msrb.mxu0 %v616_v16 }
  0x30   :  { %262 = vmatpush.msrb.mxu3 %v511_v1  ;;  %219 = vmatpush.msrb.mxu1 %v518_v2 }
  0x31   :  { %241 = vmatpush.msrb.mxu2 %v518_v2  ;;  %297 = vmatpush.msrb.mxu0 %v625_v17 }
  0x32   :  { %263 = vmatpush.msrb.mxu3 %v518_v2  ;;  %220 = vmatpush.msrb.mxu1 %v526_v3 }
  0x33   :  { %242 = vmatpush.msrb.mxu2 %v526_v3  ;;  %298 = vmatpush.msrb.mxu0 %v634_v18 }
  0x34   :  { %264 = vmatpush.msrb.mxu3 %v526_v3  ;;  %221 = vmatpush.msrb.mxu1 %v536_v7 }
  0x35   :  { %243 = vmatpush.msrb.mxu2 %v536_v7  ;;  %375 = vmatmul.msk.f32.gmra.mxu0 %vm69_vm0, %v56_v20  ;;  %v388_v20 = vld [vmem:[%s767_s5] ss:$0 sm:$0xff] }
  0x36   :  { %265 = vmatpush.msrb.mxu3 %v536_v7  ;;  %222 = vmatpush.msrb.mxu1 %v544_v8 }
  0x37   :  { %244 = vmatpush.msrb.mxu2 %v544_v8 }
  0x38   :  { %266 = vmatpush.msrb.mxu3 %v544_v8  ;;  %223 = vmatpush.msrb.mxu1 %v553_v9 }
  0x39   :  { %245 = vmatpush.msrb.mxu2 %v553_v9 }
  0x3a   :  { %267 = vmatpush.msrb.mxu3 %v553_v9  ;;  %224 = vmatpush.msrb.mxu1 %v562_v10 }
  0x3b   :  { %246 = vmatpush.msrb.mxu2 %v562_v10 }
  0x3c   :  { %268 = vmatpush.msrb.mxu3 %v562_v10  ;;  %225 = vmatpush.msrb.mxu1 %v571_v11 }
  0x3d   :  { %247 = vmatpush.msrb.mxu2 %v571_v11  ;;  %376 = vmatmul.msk.f32.gmra.mxu0 %vm69_vm0, %v57_v27 }
  0x3e   :  { %269 = vmatpush.msrb.mxu3 %v571_v11  ;;  %226 = vmatpush.msrb.mxu1 %v580_v12 }
  0x3f   :  { %248 = vmatpush.msrb.mxu2 %v580_v12 }
  0x40   :  { %270 = vmatpush.msrb.mxu3 %v580_v12  ;;  %227 = vmatpush.msrb.mxu1 %v589_v13 }
  0x41   :  { %249 = vmatpush.msrb.mxu2 %v589_v13 }
  0x42   :  { %271 = vmatpush.msrb.mxu3 %v589_v13  ;;  %228 = vmatpush.msrb.mxu1 %v598_v14 }
  0x43   :  { %250 = vmatpush.msrb.mxu2 %v598_v14 }
  0x44   :  { %272 = vmatpush.msrb.mxu3 %v598_v14  ;;  %229 = vmatpush.msrb.mxu1 %v607_v15 }
  0x45   :  { %251 = vmatpush.msrb.mxu2 %v607_v15  ;;  %377 = vmatmul.msk.f32.gmra.mxu0 %vm69_vm0, %v58_v33 }
  0x46   :  { %273 = vmatpush.msrb.mxu3 %v607_v15  ;;  %230 = vmatpush.msrb.mxu1 %v616_v16 }
  0x47   :  { %252 = vmatpush.msrb.mxu2 %v616_v16 }
  0x48   :  { %274 = vmatpush.msrb.mxu3 %v616_v16  ;;  %231 = vmatpush.msrb.mxu1 %v625_v17 }
  0x49   :  { %253 = vmatpush.msrb.mxu2 %v625_v17 }
  0x4a   :  { %275 = vmatpush.msrb.mxu3 %v625_v17  ;;  %232 = vmatpush.msrb.mxu1 %v634_v18 }
  0x4b   :  { %254 = vmatpush.msrb.mxu2 %v634_v18 }
  0x4c   :  { %276 = vmatpush.msrb.mxu3 %v634_v18  ;;  %305 = vmatpush.msra.mxu1 %v506_v0  ;;  %v337_v0 = vld [vmem:[#allocation4 + $0x50] sm:$0xff] }
  0x4d   :  { %378 = vmatmul.msk.f32.gmra.mxu0 %vm69_vm0, %v59_v39 }
  0x4e   :  { %306 = vmatpush.msra.mxu1 %v511_v1  ;;  %v336_v1 = vld [vmem:[#allocation4 + $0x48] sm:$0xff] }
  0x50   :  { %307 = vmatpush.msra.mxu1 %v518_v2 }
  0x52   :  { %308 = vmatpush.msra.mxu1 %v526_v3  ;;  %v335_v3 = vld [vmem:[#allocation4 + $0x40] sm:$0xff] }
  0x54   :  { %309 = vmatpush.msra.mxu1 %v536_v7 }
  0x55   :  { %379 = vmatmul.msk.f32.gmra.mxu0 %vm69_vm0, %v60_v45 }
  0x56   :  { %310 = vmatpush.msra.mxu1 %v544_v8 }
  0x58   :  { %311 = vmatpush.msra.mxu1 %v553_v9 }
  0x5a   :  { %312 = vmatpush.msra.mxu1 %v562_v10 }
  0x5c   :  { %313 = vmatpush.msra.mxu1 %v571_v11  ;;  %v331_v11 = vld [vmem:[#allocation4 + $0x20] sm:$0xff] }
  0x5d   :  { %380 = vmatmul.msk.f32.gmra.mxu0 %vm69_vm0, %v61_v46 }
  0x5e   :  { %314 = vmatpush.msra.mxu1 %v580_v12  ;;  %v330_v12 = vld [vmem:[#allocation4 + $0x18] sm:$0xff] }
  0x60   :  { %315 = vmatpush.msra.mxu1 %v589_v13  ;;  %v329_v13 = vld [vmem:[#allocation4 + $0x10] sm:$0xff] }
  0x62   :  { %316 = vmatpush.msra.mxu1 %v598_v14  ;;  %v328_v14 = vld [vmem:[#allocation4 + $0x8] sm:$0xff] }
  0x64   :  { %317 = vmatpush.msra.mxu1 %v607_v15  ;;  %v327_v15 = vld [vmem:[#allocation4] sm:$0xff] }
  0x65   :  { %381 = vmatmul.msk.f32.gmra.mxu0 %vm69_vm0, %v62_v52 }
  0x66   :  { %318 = vmatpush.msra.mxu1 %v616_v16 }
  0x68   :  { %319 = vmatpush.msra.mxu1 %v625_v17 }
  0x6a   :  { %320 = vmatpush.msra.mxu1 %v634_v18 }
  0x8f   :  { %v111_v22 = vpop.f32.mrf.mxu0 }
  0x90   :  { %v112_v23 = vadd.f32 %v722_v21, %v111_v22 }
  0xa8   :  { %v168_v24 = vpop.f32.mrf.mxu1 }
  0xa9   :  { %v171_v25 = vadd.f32 %v168_v24, %v112_v23 }
  0xab   :  { %389 = vtanh.f32 %v171_v25 }
  0xb1   :  { %v390_v26 = vpop.eup %389 }
  0xb2   :  { %189 = vmatmul.f32.vlgmr.msra.gmra.mxu2 %v390_v26  ;;  %v114_v28 = vpop.f32.mrf.mxu0 }
  0xb3   :  { %v115_v29 = vadd.f32 %v722_v21, %v114_v28  ;;  %347 = vmatpush.msra.mxu2 %v342_v58 }
  0xb5   :  { %348 = vmatpush.msra.mxu2 %v341_v59 }
  0xb7   :  { %349 = vmatpush.msra.mxu2 %v340_v61 }
  0xb9   :  { %350 = vmatpush.msra.mxu2 %v339_v62 }
  0xba   :  { %v117_v34 = vpop.f32.mrf.mxu0 }
  0xbb   :  { %v118_v35 = vadd.f32 %v722_v21, %v117_v34  ;;  %351 = vmatpush.msra.mxu2 %v338_v63 }
  0xbd   :  { %352 = vmatpush.msra.mxu2 %v337_v0 }
  0xbf   :  { %353 = vmatpush.msra.mxu2 %v336_v1 }
  0xc1   :  { %354 = vmatpush.msra.mxu2 %v335_v3 }
  0xc2   :  { %v120_v40 = vpop.f32.mrf.mxu0 }
  0xc3   :  { %v121_v41 = vadd.f32 %v722_v21, %v120_v40  ;;  %355 = vmatpush.msra.mxu2 %v334_v4 }
  0xc5   :  { %356 = vmatpush.msra.mxu2 %v333_v5 }
  0xc7   :  { %357 = vmatpush.msra.mxu2 %v332_v6 }
  0xc9   :  { %358 = vmatpush.msra.mxu2 %v331_v11 }
  0xca   :  { %v123_v47 = vpop.f32.mrf.mxu0 }
  0xcb   :  { %v124_v48 = vadd.f32 %v722_v21, %v123_v47  ;;  %359 = vmatpush.msra.mxu2 %v330_v12 }
  0xcd   :  { %360 = vmatpush.msra.mxu2 %v329_v13 }
  0xcf   :  { %361 = vmatpush.msra.mxu2 %v328_v14 }
  0xd1   :  { %362 = vmatpush.msra.mxu2 %v327_v15 }
  0xd2   :  { %v126_v53 = vpop.f32.mrf.mxu0 }
  0xd3   :  { %v127_v54 = vadd.f32 %v722_v21, %v126_v53 }
  0xda   :  { %v129_v60 = vpop.f32.mrf.mxu0 }
  0xdb   :  { %v130_v7 = vadd.f32 %v722_v21, %v129_v60 }
  0xe2   :  { %v132_v2 = vpop.f32.mrf.mxu0 }
  0xe3   :  { %v133_v16 = vadd.f32 %v722_v21, %v132_v2 }
 0x135   :  { %v190_v30 = vpop.f32.mrf.mxu2 }
 0x136   :  { %v193_v31 = vadd.f32 %v190_v30, %v115_v29 }
 0x138   :  { %391 = vtanh.f32 %v193_v31 }
 0x13e   :  { %v392_v32 = vpop.eup %391 }
 0x13f   :  { %211 = vmatmul.f32.vlgmr.msra.gmra.mxu3 %v392_v32 }
 0x1c2   :  { %v212_v36 = vpop.f32.mrf.mxu3 }
 0x1c3   :  { %v215_v37 = vadd.f32 %v212_v36, %v118_v35 }
 0x1c5   :  { %393 = vtanh.f32 %v215_v37 }
 0x1cb   :  { %v394_v38 = vpop.eup %393 }
 0x1cc   :  { %233 = vmatmul.f32.vlgmr.msrb.gmra.mxu1 %v394_v38 }
 0x249   :  { %v234_v42 = vpop.f32.mrf.mxu1 }
 0x24a   :  { %v237_v43 = vadd.f32 %v234_v42, %v121_v41 }
 0x24c   :  { %395 = vtanh.f32 %v237_v43 }
 0x252   :  { %v396_v44 = vpop.eup %395 }
 0x253   :  { %255 = vmatmul.f32.vlgmr.msrb.gmra.mxu2 %v396_v44 }
 0x2d6   :  { %v256_v49 = vpop.f32.mrf.mxu2 }
 0x2d7   :  { %v259_v50 = vadd.f32 %v256_v49, %v124_v48 }
 0x2d9   :  { %397 = vtanh.f32 %v259_v50 }
 0x2df   :  { %v398_v51 = vpop.eup %397 }
 0x2e0   :  { %277 = vmatmul.f32.vlgmr.msrb.gmra.mxu3 %v398_v51 }
 0x363   :  { %v278_v55 = vpop.f32.mrf.mxu3 }
 0x364   :  { %v281_v56 = vadd.f32 %v278_v55, %v127_v54 }
 0x366   :  { %399 = vtanh.f32 %v281_v56 }
 0x36c   :  { %v400_v57 = vpop.eup %399 }
 0x36d   :  { %299 = vmatmul.f32.vlgmr.msrb.gmra.mxu0 %v400_v57 }
 0x3ea   :  { %v300_v8 = vpop.f32.mrf.mxu0 }
 0x3eb   :  { %v303_v9 = vadd.f32 %v300_v8, %v130_v7 }
 0x3ed   :  { %401 = vtanh.f32 %v303_v9 }
 0x3f3   :  { %v402_v10 = vpop.eup %401 }
 0x3f4   :  { %321 = vmatmul.f32.vlgmr.msra.gmra.mxu1 %v402_v10 }
 0x471   :  { %v322_v17 = vpop.f32.mrf.mxu1 }
 0x472   :  { %v325_v18 = vadd.f32 %v322_v17, %v133_v16 }
 0x474   :  { %403 = vtanh.f32 %v325_v18 }
 0x47a   :  { %v404_v19 = vpop.eup %403 }
 0x47b   :  { %363 = vmatmul.f32.vlgmr.msra.gmra.mxu2 %v404_v19 }
 0x4fe   :  { %v364_v22 = vpop.f32.mrf.mxu2 }
 0x4ff   :  { %v365_v23 = vadd.f32 %v388_v20, %v364_v22 }
 0x501   :  { %367 = vst [vmem:[%s768_s6] sm:$0xff] %v365_v23 }
 0x502   :  { %372 = vsyncpa [#allocation3], 1 }
 0x503   :  { %373 = vsyncpa [#allocation5], 1 }

</bundles_post_ra>
